<compile_context>
chip_gen: v7x
topology: tpu7x:2x2x1
jax: 0.10.0
libtpu: 0.0.40
codegen_flags: <defaults>
</compile_context>

<pallas_src>
import math

import jax
import jax.numpy as jnp
from jax.experimental import pallas as pl
from jax.experimental.pallas import tpu as pltpu

_SELU_ALPHA = 1.6732632423543772
_SELU_SCALE = 1.0507009873554805
_LOG_2PI = math.log(2.0 * math.pi)


def _selu(x):
    return _SELU_SCALE * jnp.where(x > 0, x, _SELU_ALPHA * (jnp.exp(x) - 1.0))


# ---------------------------------------------------------------------------
# Parameter packing -- hoisted out of the per-call path (run once per policy update).
# ---------------------------------------------------------------------------

def pack_actor_critic_params(actor_params, critic_params, log_std, obs_dim, *, fold=4):
    """Packs the fused actor||critic MLP into two dense slabs for the folded kernel.

    Folded layout (segment j in [0, fold) of a folded row == original row fold*i + j):
      input  cols [in_w*j : in_w*j+obs]          = obs
             cols [in_w*j+obs : in_w*(j+1)]      = eps
      hidden cols [H2*j : H2*(j+1)]              = actor(hid) || critic(hid)
      output cols [ow*j : ow*(j+1)]              = [mean(A) | value(1) | actions(A) | lp(1) | 0 pad]

    Weight slab rows (all blocks padded to Hf = fold*2*hid columns):
      [0,  r0)  layer-0 weight  (in_f, Hf)   block-diag over segments, zero rows for eps
      [r0, r1)  layer-1 weight  (Hf,  Hf)    block-diag
      [r1, r2)  layer-2 weight  (Hf,  Hf)    block-diag
      [r2, r3)  head weight     (Hf,  out_f) mean / value / mean-copy (for actions) cols
      [r3, r4)  E_scale         (in_f, out_f) places eps*scale into the action columns
      [r4, r5)  E_lp            (in_f, out_f) sums -0.5*eps^2 into the log-prob column
    so the entire epilogue is two extra matmuls and the output store is lane-dense.
    """
    f32 = jnp.float32
    hid = actor_params[0][0].shape[1]
    A = actor_params[-1][0].shape[1]
    H2 = 2 * hid
    in_w = obs_dim + A
    in_f = fold * in_w
    Hf = fold * H2
    base = 128 // math.gcd(128, fold)                 # keep fold*ow a multiple of 128 lanes
    ow = pl.cdiv(2 * A + 2, base) * base
    out_f = fold * ow
    assert 2 * A + 2 <= ow and A + 1 <= H2 and out_f <= Hf

    def cat(a, c):
        return jnp.concatenate([a, c], axis=-1)

    def blk2(a, c):
        ra, ca = a.shape
        rc, cc = c.shape
        top = jnp.concatenate([a, jnp.zeros((ra, cc), f32)], axis=1)
        bot = jnp.concatenate([jnp.zeros((rc, ca), f32), c], axis=1)
        return jnp.concatenate([top, bot], axis=0)

    # fused (actor || critic) per-layer weights, (in, out) layout
    w0 = cat(actor_params[0][0], critic_params[0][0]).astype(f32)          # (obs, 2H)
    w1 = blk2(actor_params[1][0].astype(f32), critic_params[1][0].astype(f32))
    w2 = blk2(actor_params[2][0].astype(f32), critic_params[2][0].astype(f32))
    b0 = cat(actor_params[0][1], critic_params[0][1]).astype(f32)
    b1 = cat(actor_params[1][1], critic_params[1][1]).astype(f32)
    b2 = cat(actor_params[2][1], critic_params[2][1]).astype(f32)

    # scale_tril quirk reproduced: per-dim scale = exp(log_std)**2 (variance, not std)
    scale = (jnp.exp(log_std) ** 2).astype(f32)
    log_det = 2.0 * jnp.sum(log_std.astype(f32))
    lp_const = (-log_det - 0.5 * A * _LOG_2PI).astype(f32)

    wa, ba = actor_params[3][0].astype(f32), actor_params[3][1].astype(f32)    # (hid, A)
    wc, bc = critic_params[3][0].astype(f32), critic_params[3][1].astype(f32)  # (hid, 1)
    head = jnp.zeros((H2, ow), f32)
    head = head.at[0:hid, 0:A].set(wa)                   # mean
    head = head.at[hid:H2, A:A + 1].set(wc)              # value
    head = head.at[0:hid, A + 1:2 * A + 1].set(wa)       # mean copy (actions = mean + eps*scale)
    bhead = jnp.zeros((ow,), f32)
    bhead = bhead.at[0:A].set(ba).at[A].set(bc[0])
    bhead = bhead.at[A + 1:2 * A + 1].set(ba).at[2 * A + 1].set(lp_const)

    # fold-way block-diagonal slabs
    W0f = jnp.zeros((in_f, Hf), f32)
    W1f = jnp.zeros((Hf, Hf), f32)
    W2f = jnp.zeros((Hf, Hf), f32)
    W3f = jnp.zeros((Hf, Hf), f32)       # only cols [0:out_f] are used
    Esc = jnp.zeros((in_f, Hf), f32)
    Elp = jnp.zeros((in_f, Hf), f32)
    for j in range(fold):
        W0f = W0f.at[in_w * j:in_w * j + obs_dim, H2 * j:H2 * (j + 1)].set(w0)
        W1f = W1f.at[H2 * j:H2 * (j + 1), H2 * j:H2 * (j + 1)].set(w1)
        W2f = W2f.at[H2 * j:H2 * (j + 1), H2 * j:H2 * (j + 1)].set(w2)
        W3f = W3f.at[H2 * j:H2 * (j + 1), ow * j:ow * (j + 1)].set(head)
        e_rows = in_w * j + obs_dim + jnp.arange(A)
        Esc = Esc.at[e_rows, ow * j + A + 1 + jnp.arange(A)].set(scale)
        Elp = Elp.at[in_w * j + obs_dim:in_w * (j + 1), ow * j + 2 * A + 1].set(-0.5)

    w_slab = jnp.concatenate([W0f, W1f, W2f, W3f, Esc, Elp], axis=0)      # (3*in_f+3*Hf, Hf)

    b_slab = jnp.zeros((8, Hf), f32)
    b_slab = b_slab.at[0, :].set(jnp.tile(b0, fold))
    b_slab = b_slab.at[1, :].set(jnp.tile(b1, fold))
    b_slab = b_slab.at[2, :].set(jnp.tile(b2, fold))
    b_slab = b_slab.at[3, 0:out_f].set(jnp.tile(bhead, fold))

    cfg = dict(obs_dim=obs_dim, act_dim=A, hid=hid, fold=fold, ow=ow,
               in_w=in_w, in_f=in_f, Hf=Hf, out_f=out_f)
    return dict(w_slab=w_slab, b_slab=b_slab, cfg=cfg,
                lp_const=lp_const, log_std=jnp.asarray(log_std, f32))


# ---------------------------------------------------------------------------
# Kernel
# ---------------------------------------------------------------------------

def _make_folded_kernel(cfg):
    in_f, Hf, out_f = cfg["in_f"], cfg["Hf"], cfg["out_f"]
    r0 = in_f
    r1 = r0 + Hf
    r2 = r1 + Hf
    r3 = r2 + Hf
    r4 = r3 + in_f
    r5 = r4 + in_f

    def kernel(x_ref, w_ref, b_ref, out_ref):
        x = x_ref[...]                                    # (bbf, in_f): fold x [obs | eps]
        # fused actor||critic MLP over the folded block-diagonal weights (f32 MXU)
        h = _selu(jnp.dot(x, w_ref[0:r0, :], preferred_element_type=jnp.float32)
                  + b_ref[0:1, :])
        h = _selu(jnp.dot(h, w_ref[r0:r1, :], preferred_element_type=jnp.float32)
                  + b_ref[1:2, :])
        h = _selu(jnp.dot(h, w_ref[r1:r2, :], preferred_element_type=jnp.float32)
                  + b_ref[2:3, :])
        # head: per segment [mean | value | mean-copy | lp_const | 0...]
        out = jnp.dot(h, w_ref[r2:r3, 0:out_f], preferred_element_type=jnp.float32) \
            + b_ref[3:4, 0:out_f]
        # epilogue as matmuls: eps*scale into action cols, -0.5*sum(eps^2) into lp col
        out = out + jnp.dot(x, w_ref[r3:r4, 0:out_f], preferred_element_type=jnp.float32)
        out = out + jnp.dot(x * x, w_ref[r4:r5, 0:out_f], preferred_element_type=jnp.float32)
        out_ref[...] = out                                # single fully lane-dense store

    return kernel


def _choose_folded_tile(Bf, block_b, fold):
    """Folded-row tile: big enough to amortize per-step cost, >=2 grid steps (v7x) when
    the batch allows it, multiple of 8 sublanes when the grid has several blocks."""
    target = max(1, min(block_b, Bf * fold) // fold)
    if Bf > target:
        return max(8, (target // 8) * 8)
    if Bf >= 16:
        return (((Bf + 1) // 2) + 7) // 8 * 8
    return Bf


# ---------------------------------------------------------------------------
# Wrapper: ActorCritic.act(observations, states, return_eval_log_prob=True)
# ---------------------------------------------------------------------------

def actor_critic_act(obs, eps, packed, *, block_b=8192):
    """Symmetric / encoder-less ActorCritic.act.  `packed` from pack_actor_critic_params.
    Returns (actions, actions_log_prob, value, actions_mean, log_std_rep, eval_log_prob)."""
    cfg = packed["cfg"]
    fold, in_f, ow, out_f = cfg["fold"], cfg["in_f"], cfg["ow"], cfg["out_f"]
    A = cfg["act_dim"]
    f32 = jnp.float32

    B = obs.shape[0]
    # merged lane-dense input stream: [obs | eps] per row, `fold` rows per folded row
    x = jnp.concatenate([obs.astype(f32), eps.astype(f32)], axis=1)      # (B, obs+A)
    Bp = pl.cdiv(B, fold) * fold
    if Bp != B:
        x = jnp.pad(x, ((0, Bp - B), (0, 0)))
    Bf = Bp // fold
    x = x.reshape(Bf, in_f)                                              # free contiguous reshape

    bbf = _choose_folded_tile(Bf, block_b, fold)
    grid = (pl.cdiv(Bf, bbf),)
    kernel = _make_folded_kernel(cfg)
    w_slab, b_slab = packed["w_slab"], packed["b_slab"]

    out = pl.pallas_call(
        kernel,
        out_shape=jax.ShapeDtypeStruct((Bf, out_f), f32),
        grid_spec=pltpu.PrefetchScalarGridSpec(
            num_scalar_prefetch=0,
            grid=grid,
            in_specs=[
                pl.BlockSpec((bbf, in_f), lambda i: (i, 0)),
                pl.BlockSpec(w_slab.shape, lambda i: (0, 0)),   # params fetched once (revisited)
                pl.BlockSpec(b_slab.shape, lambda i: (0, 0)),
            ],
            out_specs=pl.BlockSpec((bbf, out_f), lambda i: (i, 0)),
        ),
        compiler_params=pltpu.CompilerParams(
            dimension_semantics=("parallel",),
            vmem_limit_bytes=32 * 1024 * 1024),
    )(x, w_slab, b_slab)

    out = out.reshape(Bp, ow)[:B]                     # free unfold + trim padded tail rows
    mean = out[:, 0:A]
    value = out[:, A:A + 1]
    actions = out[:, A + 1:2 * A + 1]
    lp = out[:, 2 * A + 1]
    eval_lp = jnp.full((B,), packed["lp_const"], f32)                    # per-call constant
    log_std_rep = jnp.broadcast_to(packed["log_std"][None, :], (B, A))   # log_std.repeat(B, 1)
    return actions, lp, value, mean, log_std_rep, eval_lp


# ---------------- deterministic parameter construction ----------------

def _orthogonal(key, out_dim, in_dim, gain):
    """Mimics torch.nn.init.orthogonal_ (gain-scaled orthogonal (out,in) weight),
       returned transposed as (in, out) for x @ W."""
    n = max(out_dim, in_dim)
    a = jax.random.normal(key, (n, n), dtype=jnp.float32)
    q, r = jnp.linalg.qr(a)
    q = q * jnp.sign(jnp.diagonal(r))
    return (gain * q[:out_dim, :in_dim]).T.astype(jnp.float32)


def _make_mlp_params(key, dims, gains):
    params = []
    for i in range(len(dims) - 1):
        key, kw, kb = jax.random.split(key, 3)
        w = _orthogonal(kw, dims[i + 1], dims[i], gains[i])
        bound = 1.0 / math.sqrt(dims[i])   # torch Linear default bias init range
        b = jax.random.uniform(kb, (dims[i + 1],), minval=-bound, maxval=bound,
                               dtype=jnp.float32)
        params.append((w, b))
    return params


# ---------------- pure-JAX reference for validation ----------------

def _ref_act(obs, eps, actor_params, critic_params, log_std):
    def mlp(x, params):
        for i, (w, b) in enumerate(params):
            x = x @ w + b
            if i < len(params) - 1:
                x = _selu(x)
        return x
    mean = mlp(obs, actor_params)
    value = mlp(obs, critic_params)
    scale = jnp.exp(log_std) ** 2
    actions = mean + eps * scale
    A = mean.shape[-1]
    log_det = jnp.sum(jnp.log(scale))
    lp = (-0.5 * jnp.sum(((actions - mean) / scale) ** 2, axis=-1)
          - log_det - 0.5 * A * _LOG_2PI)
    eval_lp = jnp.full((mean.shape[0],), -log_det - 0.5 * A * _LOG_2PI)
    return actions, lp, value, mean, eval_lp


if __name__ == "__main__":
    B, OBS, A = 8, 32, 8
    HID = [32, 32, 32]
    initial_std = 0.8

    key = jax.random.PRNGKey(0)
    k_obs, k_eps, k_actor, k_critic = jax.random.split(key, 4)

    observations = jax.random.normal(k_obs, (B, OBS), dtype=jnp.float32)
    # TODO(synk): torch's MultivariateNormal.sample() RNG is host-side; the
    # standard-normal noise is pre-generated here and consumed by the kernel.
    eps = jax.random.normal(k_eps, (B, A), dtype=jnp.float32)

    actor_params = _make_mlp_params(
        k_actor, [OBS] + HID + [A], [math.sqrt(2.0)] * len(HID) + [0.01])
    critic_params = _make_mlp_params(
        k_critic, [OBS] + HID + [1], [math.sqrt(2.0)] * len(HID) + [1.0])
    log_std = jnp.full((A,), math.log(initial_std), dtype=jnp.float32)

    # pack once (per policy update), then call act as often as needed
    packed = pack_actor_critic_params(actor_params, critic_params, log_std, OBS, fold=4)

    outs = actor_critic_act(observations, eps, packed)
    outs = jax.block_until_ready(outs)
    actions, lp, value, mean, log_std_rep, eval_lp = outs

    r_actions, r_lp, r_value, r_mean, r_eval_lp = _ref_act(
        observations, eps, actor_params, critic_params, log_std)

    assert actions.shape == (B, A) and mean.shape == (B, A)
    assert lp.shape == (B,) and eval_lp.shape == (B,)
    assert value.shape == (B, 1) and log_std_rep.shape == (B, A)
    for got, want in [(actions, r_actions), (lp, r_lp), (value, r_value),
                      (mean, r_mean), (eval_lp, r_eval_lp)]:
        assert jnp.allclose(got, want, rtol=1e-3, atol=1e-3), "mismatch vs reference"

    print("KERNEL_OK")
</pallas_src>

<mosaic_0001>
module attributes {stable_mosaic.version = 11 : i64} {
  func.func @kernel(%arg0: i32, %arg1: memref<2x160xf32, #tpu.memory_space<vmem>>, %arg2: memref<1248x256xf32, #tpu.memory_space<vmem>>, %arg3: memref<8x256xf32, #tpu.memory_space<vmem>>, %arg4: memref<2x128xf32, #tpu.memory_space<vmem>>) attributes {dimension_semantics = [#tpu.dimension_semantics<parallel>], iteration_bounds = array<i64: 1>, scalar_prefetch = 0 : i64, scratch_operands = 0 : i64, tpu.core_type = #tpu.core_type<tc>, window_params = [{transform_indices = @transform_0, window_bounds = array<i64: 2, 160>}, {pipeline_mode = #tpu.pipeline_mode<synchronous>, transform_indices = @transform_1, window_bounds = array<i64: 1248, 256>}, {pipeline_mode = #tpu.pipeline_mode<synchronous>, transform_indices = @transform_2, window_bounds = array<i64: 8, 256>}, {transform_indices = @transform_3, window_bounds = array<i64: 2, 128>}]} {
    %c0 = arith.constant 0 : index
    %c0_0 = arith.constant 0 : index
    %0 = vector.load %arg1[%c0, %c0_0] : memref<2x160xf32, #tpu.memory_space<vmem>>, vector<2x160xf32>
    %c0_1 = arith.constant 0 : index
    %c0_2 = arith.constant 0 : index
    %1 = vector.load %arg2[%c0_1, %c0_2] : memref<1248x256xf32, #tpu.memory_space<vmem>>, vector<160x256xf32>
    %cst = arith.constant dense<0.000000e+00> : vector<2x256xf32>
    %2 = tpu.matmul %0, %1, %cst {dimension_numbers = #tpu.dot_dimension_numbers<[1], [0], [0], [1], [0, 0, 1, 1], [], []>} : vector<2x160xf32>, vector<160x256xf32>, vector<2x256xf32> -> vector<2x256xf32>
    %c0_3 = arith.constant 0 : index
    %c0_4 = arith.constant 0 : index
    %3 = vector.load %arg3[%c0_3, %c0_4] : memref<8x256xf32, #tpu.memory_space<vmem>>, vector<1x256xf32>
    %4 = vector.broadcast %3 : vector<1x256xf32> to vector<2x256xf32>
    %5 = arith.addf %2, %4 : vector<2x256xf32>
    %cst_5 = arith.constant 0.000000e+00 : f32
    %6 = vector.broadcast %cst_5 : f32 to vector<2x256xf32>
    %7 = arith.cmpf ogt, %5, %6 : vector<2x256xf32>
    %8 = math.exp %5 : vector<2x256xf32>
    %cst_6 = arith.constant 1.000000e+00 : f32
    %9 = vector.broadcast %cst_6 : f32 to vector<2x256xf32>
    %10 = arith.subf %8, %9 : vector<2x256xf32>
    %cst_7 = arith.constant 1.67326319 : f32
    %11 = vector.broadcast %cst_7 : f32 to vector<2x256xf32>
    %12 = arith.mulf %11, %10 : vector<2x256xf32>
    %13 = arith.select %7, %5, %12 : vector<2x256xi1>, vector<2x256xf32>
    %cst_8 = arith.constant 1.05070102 : f32
    %14 = vector.broadcast %cst_8 : f32 to vector<2x256xf32>
    %15 = arith.mulf %14, %13 : vector<2x256xf32>
    %c160 = arith.constant 160 : index
    %c0_9 = arith.constant 0 : index
    %16 = vector.load %arg2[%c160, %c0_9] : memref<1248x256xf32, #tpu.memory_space<vmem>>, vector<256x256xf32>
    %cst_10 = arith.constant dense<0.000000e+00> : vector<2x256xf32>
    %17 = tpu.matmul %15, %16, %cst_10 {dimension_numbers = #tpu.dot_dimension_numbers<[1], [0], [0], [1], [0, 0, 1, 1], [], []>} : vector<2x256xf32>, vector<256x256xf32>, vector<2x256xf32> -> vector<2x256xf32>
    %c1 = arith.constant 1 : index
    %c0_11 = arith.constant 0 : index
    %18 = vector.load %arg3[%c1, %c0_11] : memref<8x256xf32, #tpu.memory_space<vmem>>, vector<1x256xf32>
    %19 = vector.broadcast %18 : vector<1x256xf32> to vector<2x256xf32>
    %20 = arith.addf %17, %19 : vector<2x256xf32>
    %cst_12 = arith.constant 0.000000e+00 : f32
    %21 = vector.broadcast %cst_12 : f32 to vector<2x256xf32>
    %22 = arith.cmpf ogt, %20, %21 : vector<2x256xf32>
    %23 = math.exp %20 : vector<2x256xf32>
    %cst_13 = arith.constant 1.000000e+00 : f32
    %24 = vector.broadcast %cst_13 : f32 to vector<2x256xf32>
    %25 = arith.subf %23, %24 : vector<2x256xf32>
    %cst_14 = arith.constant 1.67326319 : f32
    %26 = vector.broadcast %cst_14 : f32 to vector<2x256xf32>
    %27 = arith.mulf %26, %25 : vector<2x256xf32>
    %28 = arith.select %22, %20, %27 : vector<2x256xi1>, vector<2x256xf32>
    %cst_15 = arith.constant 1.05070102 : f32
    %29 = vector.broadcast %cst_15 : f32 to vector<2x256xf32>
    %30 = arith.mulf %29, %28 : vector<2x256xf32>
    %c416 = arith.constant 416 : index
    %c0_16 = arith.constant 0 : index
    %31 = vector.load %arg2[%c416, %c0_16] : memref<1248x256xf32, #tpu.memory_space<vmem>>, vector<256x256xf32>
    %cst_17 = arith.constant dense<0.000000e+00> : vector<2x256xf32>
    %32 = tpu.matmul %30, %31, %cst_17 {dimension_numbers = #tpu.dot_dimension_numbers<[1], [0], [0], [1], [0, 0, 1, 1], [], []>} : vector<2x256xf32>, vector<256x256xf32>, vector<2x256xf32> -> vector<2x256xf32>
    %c2 = arith.constant 2 : index
    %c0_18 = arith.constant 0 : index
    %33 = vector.load %arg3[%c2, %c0_18] : memref<8x256xf32, #tpu.memory_space<vmem>>, vector<1x256xf32>
    %34 = vector.broadcast %33 : vector<1x256xf32> to vector<2x256xf32>
    %35 = arith.addf %32, %34 : vector<2x256xf32>
    %cst_19 = arith.constant 0.000000e+00 : f32
    %36 = vector.broadcast %cst_19 : f32 to vector<2x256xf32>
    %37 = arith.cmpf ogt, %35, %36 : vector<2x256xf32>
    %38 = math.exp %35 : vector<2x256xf32>
    %cst_20 = arith.constant 1.000000e+00 : f32
    %39 = vector.broadcast %cst_20 : f32 to vector<2x256xf32>
    %40 = arith.subf %38, %39 : vector<2x256xf32>
    %cst_21 = arith.constant 1.67326319 : f32
    %41 = vector.broadcast %cst_21 : f32 to vector<2x256xf32>
    %42 = arith.mulf %41, %40 : vector<2x256xf32>
    %43 = arith.select %37, %35, %42 : vector<2x256xi1>, vector<2x256xf32>
    %cst_22 = arith.constant 1.05070102 : f32
    %44 = vector.broadcast %cst_22 : f32 to vector<2x256xf32>
    %45 = arith.mulf %44, %43 : vector<2x256xf32>
    %c672 = arith.constant 672 : index
    %c0_23 = arith.constant 0 : index
    %46 = vector.load %arg2[%c672, %c0_23] : memref<1248x256xf32, #tpu.memory_space<vmem>>, vector<256x128xf32>
    %cst_24 = arith.constant dense<0.000000e+00> : vector<2x128xf32>
    %47 = tpu.matmul %45, %46, %cst_24 {dimension_numbers = #tpu.dot_dimension_numbers<[1], [0], [0], [1], [0, 0, 1, 1], [], []>} : vector<2x256xf32>, vector<256x128xf32>, vector<2x128xf32> -> vector<2x128xf32>
    %c3 = arith.constant 3 : index
    %c0_25 = arith.constant 0 : index
    %48 = vector.load %arg3[%c3, %c0_25] : memref<8x256xf32, #tpu.memory_space<vmem>>, vector<1x128xf32>
    %49 = vector.broadcast %48 : vector<1x128xf32> to vector<2x128xf32>
    %50 = arith.addf %47, %49 : vector<2x128xf32>
    %c928 = arith.constant 928 : index
    %c0_26 = arith.constant 0 : index
    %51 = vector.load %arg2[%c928, %c0_26] : memref<1248x256xf32, #tpu.memory_space<vmem>>, vector<160x128xf32>
    %cst_27 = arith.constant dense<0.000000e+00> : vector<2x128xf32>
    %52 = tpu.matmul %0, %51, %cst_27 {dimension_numbers = #tpu.dot_dimension_numbers<[1], [0], [0], [1], [0, 0, 1, 1], [], []>} : vector<2x160xf32>, vector<160x128xf32>, vector<2x128xf32> -> vector<2x128xf32>
    %53 = arith.addf %50, %52 : vector<2x128xf32>
    %54 = arith.mulf %0, %0 : vector<2x160xf32>
    %c1088 = arith.constant 1088 : index
    %c0_28 = arith.constant 0 : index
    %55 = vector.load %arg2[%c1088, %c0_28] : memref<1248x256xf32, #tpu.memory_space<vmem>>, vector<160x128xf32>
    %cst_29 = arith.constant dense<0.000000e+00> : vector<2x128xf32>
    %56 = tpu.matmul %54, %55, %cst_29 {dimension_numbers = #tpu.dot_dimension_numbers<[1], [0], [0], [1], [0, 0, 1, 1], [], []>} : vector<2x160xf32>, vector<160x128xf32>, vector<2x128xf32> -> vector<2x128xf32>
    %57 = arith.addf %53, %56 : vector<2x128xf32>
    %c0_30 = arith.constant 0 : index
    %c0_31 = arith.constant 0 : index
    %58 = vector.load %arg4[%c0_30, %c0_31] : memref<2x128xf32, #tpu.memory_space<vmem>>, vector<2x128xf32>
    tpu.vector_store %arg4[%c0_30, %c0_31], %57 {strides = array<i32>} : memref<2x128xf32, #tpu.memory_space<vmem>>, vector<2x128xf32>,
    return
  }
  func.func @transform_0(%arg0: i32) -> (i32, i32) {
    %c0_i32 = arith.constant 0 : i32
    %c0_i32_0 = arith.constant 0 : i32
    return %arg0, %c0_i32 : i32, i32
  }
  func.func @transform_1(%arg0: i32) -> (i32, i32) {
    %c0_i32 = arith.constant 0 : i32
    %c0_i32_0 = arith.constant 0 : i32
    %c0_i32_1 = arith.constant 0 : i32
    return %c0_i32, %c0_i32_0 : i32, i32
  }
  func.func @transform_2(%arg0: i32) -> (i32, i32) {
    %c0_i32 = arith.constant 0 : i32
    %c0_i32_0 = arith.constant 0 : i32
    %c0_i32_1 = arith.constant 0 : i32
    return %c0_i32, %c0_i32_0 : i32, i32
  }
  func.func @transform_3(%arg0: i32) -> (i32, i32) {
    %c0_i32 = arith.constant 0 : i32
    %c0_i32_0 = arith.constant 0 : i32
    return %arg0, %c0_i32 : i32, i32
  }
}

</mosaic_0001>

<bundles_post_ra>
// kernel: tpu_custom_call.1
= control target key start
LH: loop header
LB: loop body
LE: loop exit
PB: predicated region body
PF: predicated region fallthrough
CT: control target
= control target key end

     0   :  { %8 = vsyncpa [#allocation3], 0  ;;  %s1396_s0 = inlined_call_operand.hbm [shape: f32[2,160], index: 0, kind: input, shape index: {}]   ;;  %s1397_s1 = inlined_call_operand.hbm [shape: f32[1248,256], index: 1, kind: input, shape index: {}]   ;;  %s1398_s2 = inlined_call_operand.hbm [shape: f32[8,256], index: 2, kind: input, shape index: {}]   ;;  %s1399_s3 = inlined_call_operand.hbm [shape: f32[2,128], index: 3, kind: output, shape index: {}]  }
   0x1   :  { %9 = vsyncpa [#allocation6], 0 }
   0x2   :  { %10 = vsyncpa [#allocation4], 0  ;;  %s1263_s12 = smov [#allocation5]   ;;  %s1169_s16 = scalar_lea.hbm %s1397_s1, 39936 }
   0x3   :  { %s26_s13 = sshll.u32 %s1263_s12, 4  ;;  %p1170_p0 = scmp.ne.s32.totalorder %s1397_s1, %s1169_s16  ;;  %s27_s13 = int_to_ptr.vmem [resolvable:$true] %s26_s13 }
   0x4   :  { %p1173_p1 = scmp.lt.u32.totalorder %s1169_s16, %s1397_s1 }
   0x6   :  { %p1175_p2 = pnand %p1173_p1, %p1170_p0 }
   0x8   :  { %1178 = shalt.err (!%p1175_p2)
}
   0x9   :  { %s1179_s21 = scalar_lea.vmem %s27_s13, 39936  ;;  %p1184_p4 = scmp.lt.s32.totalorder %s27_s13, %s27_s13 }
   0xa   :  { %p1180_p3 = scmp.ne.s32.totalorder %s27_s13, %s1179_s21  ;;  %p1185_p5 = scmp.lt.s32.totalorder %s1179_s21, %s1179_s21 }
   0xc   :  { %p1186_p6 = por %p1185_p5, %p1184_p4 }
   0xe   :  { %p1187_p7 = pnand %p1186_p6, %p1180_p3 }
  0x10   :  { %1190 = shalt.err (!%p1187_p7)
}
  0x11   :  { %s1264_s22 = smov 256   ;;  %s1265_s23 = smov 16  }
  0x12   :  { %32 = dma.hbm_to_vmem [thread:$0]  %s1397_s1, 39936, %s27_s13, [#allocation6], %s1264_s22, %s1264_s22, %s1265_s23  }
  0x13   :  { %s1266_s26 = smov [#allocation2]   ;;  %s1267_s28 = smov [#allocation7]  }
  0x14   :  { %s17_s27 = sshll.u32 %s1266_s26, 4  ;;  %s39_s29 = sshll.u32 %s1267_s28, 4  ;;  %s18_s27 = int_to_ptr.vmem [resolvable:$true] %s17_s27  ;;  %s40_s29 = int_to_ptr.vmem [resolvable:$true] %s39_s29 }
  0x15   :  { %s1191_s5 = scalar_lea.hbm %s1396_s0, 64 }
  0x16   :  { %p1192_p8 = scmp.ne.s32.totalorder %s1396_s0, %s1191_s5  ;;  %p1195_p9 = scmp.lt.u32.totalorder %s1191_s5, %s1396_s0 }
  0x18   :  { %p1197_p10 = pnand %p1195_p9, %p1192_p8 }
  0x1a   :  { %1200 = shalt.err (!%p1197_p10)
}
  0x1b   :  { %s1201_s1 = scalar_lea.vmem %s18_s27, 64  ;;  %p1206_p12 = scmp.lt.s32.totalorder %s18_s27, %s18_s27 }
  0x1c   :  { %p1202_p11 = scmp.ne.s32.totalorder %s18_s27, %s1201_s1  ;;  %p1207_p13 = scmp.lt.s32.totalorder %s1201_s1, %s1201_s1 }
  0x1e   :  { %p1208_p0 = por %p1207_p13, %p1206_p12 }
  0x20   :  { %p1209_p1 = pnand %p1208_p0, %p1202_p11 }
  0x22   :  { %1212 = shalt.err (!%p1209_p1)
}
  0x23   :  { %20 = dma.hbm_to_vmem [thread:$0]  %s1396_s0, 64, %s18_s27, [#allocation3]  }
  0x24   :  { %s1213_s14 = scalar_lea.hbm %s1398_s2, 256 }
  0x25   :  { %p1214_p2 = scmp.ne.s32.totalorder %s1398_s2, %s1213_s14  ;;  %p1217_p3 = scmp.lt.u32.totalorder %s1213_s14, %s1398_s2 }
  0x27   :  { %p1219_p4 = pnand %p1217_p3, %p1214_p2 }
  0x29   :  { %1222 = shalt.err (!%p1219_p4)
}
  0x2a   :  { %s1223_s19 = scalar_lea.vmem %s40_s29, 256  ;;  %p1228_p6 = scmp.lt.s32.totalorder %s40_s29, %s40_s29 }
  0x2b   :  { %p1224_p5 = scmp.ne.s32.totalorder %s40_s29, %s1223_s19  ;;  %p1229_p7 = scmp.lt.s32.totalorder %s1223_s19, %s1223_s19 }
  0x2d   :  { %p1230_p8 = por %p1229_p7, %p1228_p6 }
  0x2f   :  { %p1231_p9 = pnand %p1230_p8, %p1224_p5 }
  0x31   :  { %1234 = shalt.err (!%p1231_p9)
}
  0x32   :  { %42 = dma.hbm_to_vmem [thread:$0]  %s1398_s2, 256, %s40_s29, [#allocation6]  }
  0x33   :  { %1257 = dma.done.wait [#allocation3], 64  }
  0x34   :  { %1258 = vsyncadd [#allocation3], 4294967232 }
  0x35   :  { %1259 = dma.done.wait [#allocation6], 40192  }
  0x36   :  { %1260 = vsyncadd [#allocation6], 4294927104  ;;  %v54_v0 = vld [vmem:[#allocation5 + $0x8] sm:$0xff]  ;;  %v56_v1 = vld [vmem:[#allocation5 + $0x18] sm:$0xff]  ;;  %v95_v12 = vlaneseq  ;;  %v1268_v13 = vmov 1983009808  }
  0x37   :  { %v53_v2 = vld [vmem:[#allocation5] sm:$0xff]  ;;  %v886_v3 = vpack.c.bf16 %v56_v1, %v54_v0  ;;  %v55_v4 = vld [vmem:[#allocation5 + $0x10] sm:$0xff]  ;;  %v58_v5 = vld [vmem:[#allocation5 + $0x28] sm:$0xff]  ;;  %v107_v14 = vunpack.c.l.s4 %v1268_v13  ;;  %vm115_vm0 = vcmask 261120   ;;  %s1270_s2 = smov [#allocation8]  }
  0x38   :  { %v60_v6 = vld [vmem:[#allocation5 + $0x38] sm:$0xff]  ;;  %v888_v7 = vpack.c.bf16 %v55_v4, %v53_v2  ;;  %v57_v9 = vld [vmem:[#allocation5 + $0x20] sm:$0xff]  ;;  %v59_v10 = vld [vmem:[#allocation5 + $0x30] sm:$0xff]  ;;  %v1327_v22 = vshrl.u32 %v95_v12, 7  ;;  %s832_s21 = sshll.u32 %s1270_s2, 4  ;;  %s833_s21 = int_to_ptr.vmem [resolvable:$true] %s832_s21 }
  0x39   :  { %v890_v8 = vpack.c.bf16 %v60_v6, %v58_v5  ;;  %v62_v11 = vld [vmem:[#allocation5 + $0x48] sm:$0xff]  ;;  %887 = vmatprep.subr.bf16.mxu0 %v886_v3  ;;  %v64_v15 = vld [vmem:[#allocation5 + $0x58] sm:$0xff]  ;;  %v892_v16 = vpack.c.bf16 %v59_v10, %v57_v9  ;;  %v61_v18 = vld [vmem:[#allocation5 + $0x40] sm:$0xff]  ;;  %v108_v23 = vunpack.c.0.s8 %v107_v14  ;;  %s1235_s22 = scalar_lea.vmem %s833_s21, 32  ;;  %p1240_p11 = scmp.lt.s32.totalorder %s833_s21, %s833_s21 }
  0x3a   :  { %889 = vmatpush1.bf16.msra.mxu0 %v888_v7  ;;  %v894_v17 = vpack.c.bf16 %v64_v15, %v62_v11  ;;  %v63_v19 = vld [vmem:[#allocation5 + $0x50] sm:$0xff]  ;;  %v66_v20 = vld [vmem:[#allocation5 + $0x68] sm:$0xff]  ;;  %v68_v21 = vld [vmem:[#allocation5 + $0x78] sm:$0xff]  ;;  %p1236_p10 = scmp.ne.s32.totalorder %s833_s21, %s1235_s22  ;;  %p1241_p12 = scmp.lt.s32.totalorder %s1235_s22, %s1235_s22 }
  0x3b   :  { %891 = vmatprep.subr.bf16.mxu0 %v890_v8  ;;  %v896_v24 = vpack.c.bf16 %v63_v19, %v61_v18  ;;  %v898_v25 = vpack.c.bf16 %v68_v21, %v66_v20  ;;  %v65_v26 = vld [vmem:[#allocation5 + $0x60] sm:$0xff]  ;;  %v67_v27 = vld [vmem:[#allocation5 + $0x70] sm:$0xff]  ;;  %v70_v28 = vld [vmem:[#allocation5 + $0x88] sm:$0xff]  ;;  %v1330_v30 = vsub.s32 %v108_v23, %v1327_v22 }
  0x3c   :  { %v72_v29 = vld [vmem:[#allocation5 + $0x98] sm:$0xff]  ;;  %v900_v31 = vpack.c.bf16 %v67_v27, %v65_v26  ;;  %v69_v32 = vld [vmem:[#allocation5 + $0x80] sm:$0xff]  ;;  %v71_v33 = vld [vmem:[#allocation5 + $0x90] sm:$0xff]  ;;  %p1242_p13 = por %p1241_p12, %p1240_p11 }
  0x3d   :  { %v74_v34 = vld [vmem:[#allocation5 + $0xa8] sm:$0xff]  ;;  %v902_v35 = vpack.c.bf16 %v72_v29, %v70_v28  ;;  %v76_v36 = vld [vmem:[#allocation5 + $0xb8] sm:$0xff]  ;;  %v203_v41 = vld [vmem:[#allocation5 + $0x140] sm:$0xff]  ;;  %v904_v48 = vpack.c.bf16 %v71_v33, %v69_v32 }
  0x3e   :  { %893 = vmatpush1.bf16.msra.mxu0 %v892_v16  ;;  %v1332_v37 = vld [vmem:[#allocation2] sm:$0xf]  ;;  %v204_v38 = vld [vmem:[#allocation5 + $0x148] sm:$0xff]  ;;  %v205_v42 = vld [vmem:[#allocation5 + $0x150] sm:$0xff]  ;;  %v906_v54 = vpack.c.bf16 %v76_v36, %v74_v34  ;;  %p1243_p0 = pnand %p1242_p13, %p1236_p10 }
  0x3f   :  { %895 = vmatprep.subr.bf16.mxu0 %v894_v17  ;;  %v1336_v39 = vrot.slane %v1332_v37, %v1330_v30  ;;  %v206_v40 = vld [vmem:[#allocation5 + $0x158] sm:$0xff]  ;;  %v928_v44 = vpack.c.bf16 %v205_v42, %v203_v41  ;;  %v208_v45 = vld [vmem:[#allocation5 + $0x168] sm:$0xff]  ;;  %v207_v47 = vld [vmem:[#allocation5 + $0x160] sm:$0xff] }
  0x40   :  { %v926_v43 = vpack.c.bf16 %v206_v40, %v204_v38  ;;  %v210_v46 = vld [vmem:[#allocation5 + $0x178] sm:$0xff]  ;;  %v209_v51 = vld [vmem:[#allocation5 + $0x170] sm:$0xff]  ;;  %v212_v52 = vld [vmem:[#allocation5 + $0x188] sm:$0xff] }
  0x41   :  { %v1340_v49 = vcombine.high %v1336_v39, %v1336_v39  ;;  %v930_v50 = vpack.c.bf16 %v210_v46, %v208_v45  ;;  %v214_v53 = vld [vmem:[#allocation5 + $0x198] sm:$0xff]  ;;  %v73_v55 = vld [vmem:[#allocation5 + $0xa0] sm:$0xff]  ;;  %v75_v56 = vld [vmem:[#allocation5 + $0xb0] sm:$0xff]  ;;  %v932_v59 = vpack.c.bf16 %v209_v51, %v207_v47 }
  0x42   :  { %897 = vmatpush1.bf16.msra.mxu0 %v896_v24  ;;  %927 = vmatprep.subr.bf16.mxu1 %v926_v43  ;;  %v78_v57 = vld [vmem:[#allocation5 + $0xc8] sm:$0xff]  ;;  %v80_v58 = vld [vmem:[#allocation5 + $0xd8] sm:$0xff]  ;;  %v934_v60 = vpack.c.bf16 %v214_v53, %v212_v52  ;;  %v211_v61 = vld [vmem:[#allocation5 + $0x180] sm:$0xff]  ;;  %v908_v63 = vpack.c.bf16 %v75_v56, %v73_v55 }
  0x43   :  { %899 = vmatprep.subr.bf16.mxu0 %v898_v25  ;;  %842 = vmatprep.mubr.msk.f32.mxu0 %vm115_vm0, %v1340_v49  ;;  %v213_v62 = vld [vmem:[#allocation5 + $0x190] sm:$0xff]  ;;  %v216_v0 = vld [vmem:[#allocation5 + $0x1a8] sm:$0xff]  ;;  %v218_v1 = vld [vmem:[#allocation5 + $0x1b8] sm:$0xff]  ;;  %v910_v2 = vpack.c.bf16 %v80_v58, %v78_v57 }
  0x44   :  { %929 = vmatpush1.bf16.msra.mxu1 %v928_v44  ;;  %v77_v3 = vld [vmem:[#allocation5 + $0xc0] sm:$0xff]  ;;  %v79_v4 = vld [vmem:[#allocation5 + $0xd0] sm:$0xff]  ;;  %v82_v5 = vld [vmem:[#allocation5 + $0xe8] sm:$0xff]  ;;  %v936_v7 = vpack.c.bf16 %v213_v62, %v211_v61  ;;  %v938_v8 = vpack.c.bf16 %v218_v1, %v216_v0 }
  0x45   :  { %931 = vmatprep.subr.bf16.mxu1 %v930_v50  ;;  %v84_v6 = vld [vmem:[#allocation5 + $0xf8] sm:$0xff]  ;;  %v215_v9 = vld [vmem:[#allocation5 + $0x1a0] sm:$0xff]  ;;  %v217_v10 = vld [vmem:[#allocation5 + $0x1b0] sm:$0xff]  ;;  %v912_v11 = vpack.c.bf16 %v79_v4, %v77_v3 }
  0x46   :  { %901 = vmatpush1.bf16.msra.mxu0 %v900_v31  ;;  %v220_v12 = vld [vmem:[#allocation5 + $0x1c8] sm:$0xff]  ;;  %v222_v13 = vld [vmem:[#allocation5 + $0x1d8] sm:$0xff]  ;;  %v914_v14 = vpack.c.bf16 %v84_v6, %v82_v5  ;;  %v81_v15 = vld [vmem:[#allocation5 + $0xe0] sm:$0xff]  ;;  %v940_v19 = vpack.c.bf16 %v217_v10, %v215_v9 }
  0x47   :  { %903 = vmatprep.subr.bf16.mxu0 %v902_v35  ;;  %v83_v16 = vld [vmem:[#allocation5 + $0xf0] sm:$0xff]  ;;  %v86_v17 = vld [vmem:[#allocation5 + $0x108] sm:$0xff]  ;;  %v88_v18 = vld [vmem:[#allocation5 + $0x118] sm:$0xff]  ;;  %v942_v20 = vpack.c.bf16 %v222_v13, %v220_v12 }
  0x48   :  { %933 = vmatpush1.bf16.msra.mxu1 %v932_v59  ;;  %v219_v21 = vld [vmem:[#allocation5 + $0x1c0] sm:$0xff]  ;;  %v221_v23 = vld [vmem:[#allocation5 + $0x1d0] sm:$0xff]  ;;  %v916_v24 = vpack.c.bf16 %v83_v16, %v81_v15  ;;  %v224_v25 = vld [vmem:[#allocation5 + $0x1e8] sm:$0xff]  ;;  %v918_v27 = vpack.c.bf16 %v88_v18, %v86_v17 }
  0x49   :  { %935 = vmatprep.subr.bf16.mxu1 %v934_v60  ;;  %v226_v26 = vld [vmem:[#allocation5 + $0x1f8] sm:$0xff]  ;;  %v85_v28 = vld [vmem:[#allocation5 + $0x100] sm:$0xff]  ;;  %v87_v29 = vld [vmem:[#allocation5 + $0x110] sm:$0xff]  ;;  %v944_v33 = vpack.c.bf16 %v221_v23, %v219_v21 }
  0x4a   :  { %905 = vmatpush1.bf16.msra.mxu0 %v904_v48  ;;  %v90_v31 = vld [vmem:[#allocation5 + $0x128] sm:$0xff]  ;;  %v92_v32 = vld [vmem:[#allocation5 + $0x138] sm:$0xff]  ;;  %v946_v34 = vpack.c.bf16 %v226_v26, %v224_v25  ;;  %v223_v35 = vld [vmem:[#allocation5 + $0x1e0] sm:$0xff]  ;;  %v920_v38 = vpack.c.bf16 %v87_v29, %v85_v28 }
  0x4b   :  { %907 = vmatprep.subr.bf16.mxu0 %v906_v54  ;;  %v225_v36 = vld [vmem:[#allocation5 + $0x1f0] sm:$0xff]  ;;  %v228_v40 = vld [vmem:[#allocation5 + $0x208] sm:$0xff]  ;;  %v230_v41 = vld [vmem:[#allocation5 + $0x218] sm:$0xff]  ;;  %v922_v42 = vpack.c.bf16 %v92_v32, %v90_v31 }
  0x4c   :  { %937 = vmatpush1.bf16.msra.mxu1 %v936_v7  ;;  %v89_v43 = vld [vmem:[#allocation5 + $0x120] sm:$0xff]  ;;  %v91_v44 = vld [vmem:[#allocation5 + $0x130] sm:$0xff]  ;;  %v948_v45 = vpack.c.bf16 %v225_v36, %v223_v35  ;;  %v950_v46 = vpack.c.bf16 %v230_v41, %v228_v40  ;;  %v232_v51 = vld [vmem:[#allocation5 + $0x228] sm:$0xff] }
  0x4d   :  { %939 = vmatprep.subr.bf16.mxu1 %v938_v8  ;;  %v227_v47 = vld [vmem:[#allocation5 + $0x200] sm:$0xff]  ;;  %v229_v48 = vld [vmem:[#allocation5 + $0x210] sm:$0xff]  ;;  %v924_v50 = vpack.c.bf16 %v91_v44, %v89_v43  ;;  %v234_v52 = vld [vmem:[#allocation5 + $0x238] sm:$0xff] }
  0x4e   :  { %909 = vmatpush1.bf16.msra.mxu0 %v908_v63  ;;  %v952_v53 = vpack.c.bf16 %v229_v48, %v227_v47  ;;  %v954_v54 = vpack.c.bf16 %v234_v52, %v232_v51  ;;  %v231_v55 = vld [vmem:[#allocation5 + $0x220] sm:$0xff]  ;;  %v233_v56 = vld [vmem:[#allocation5 + $0x230] sm:$0xff]  ;;  %v236_v57 = vld [vmem:[#allocation5 + $0x248] sm:$0xff] }
  0x4f   :  { %911 = vmatprep.subr.bf16.mxu0 %v910_v2  ;;  %v238_v58 = vld [vmem:[#allocation5 + $0x258] sm:$0xff]  ;;  %v956_v59 = vpack.c.bf16 %v233_v56, %v231_v55  ;;  %v235_v61 = vld [vmem:[#allocation5 + $0x240] sm:$0xff]  ;;  %v237_v62 = vld [vmem:[#allocation5 + $0x250] sm:$0xff] }
  0x50   :  { %941 = vmatpush1.bf16.msra.mxu1 %v940_v19  ;;  %v958_v60 = vpack.c.bf16 %v238_v58, %v236_v57  ;;  %v240_v63 = vld [vmem:[#allocation5 + $0x268] sm:$0xff]  ;;  %v242_v0 = vld [vmem:[#allocation5 + $0x278] sm:$0xff]  ;;  %v960_v1 = vpack.c.bf16 %v237_v62, %v235_v61  ;;  %v239_v3 = vld [vmem:[#allocation5 + $0x260] sm:$0xff] }
  0x51   :  { %943 = vmatprep.subr.bf16.mxu1 %v942_v20  ;;  %v962_v2 = vpack.c.bf16 %v242_v0, %v240_v63  ;;  %v241_v4 = vld [vmem:[#allocation5 + $0x270] sm:$0xff]  ;;  %v244_v6 = vld [vmem:[#allocation5 + $0x288] sm:$0xff]  ;;  %v246_v7 = vld [vmem:[#allocation5 + $0x298] sm:$0xff] }
  0x52   :  { %913 = vmatpush1.bf16.msra.mxu0 %v912_v11  ;;  %v964_v5 = vpack.c.bf16 %v241_v4, %v239_v3  ;;  %v966_v8 = vpack.c.bf16 %v246_v7, %v244_v6  ;;  %v243_v9 = vld [vmem:[#allocation5 + $0x280] sm:$0xff]  ;;  %v245_v10 = vld [vmem:[#allocation5 + $0x290] sm:$0xff]  ;;  %v248_v12 = vld [vmem:[#allocation5 + $0x2a8] sm:$0xff] }
  0x53   :  { %915 = vmatprep.subr.bf16.mxu0 %v914_v14  ;;  %v968_v11 = vpack.c.bf16 %v245_v10, %v243_v9  ;;  %v250_v13 = vld [vmem:[#allocation5 + $0x2b8] sm:$0xff]  ;;  %v247_v15 = vld [vmem:[#allocation5 + $0x2a0] sm:$0xff]  ;;  %v249_v16 = vld [vmem:[#allocation5 + $0x2b0] sm:$0xff] }
  0x54   :  { %945 = vmatpush1.bf16.msra.mxu1 %v944_v33  ;;  %v970_v14 = vpack.c.bf16 %v250_v13, %v248_v12  ;;  %v972_v17 = vpack.c.bf16 %v249_v16, %v247_v15  ;;  %v252_v18 = vld [vmem:[#allocation5 + $0x2c8] sm:$0xff]  ;;  %v254_v19 = vld [vmem:[#allocation5 + $0x2d8] sm:$0xff]  ;;  %v251_v21 = vld [vmem:[#allocation5 + $0x2c0] sm:$0xff] }
  0x55   :  { %947 = vmatprep.subr.bf16.mxu1 %v946_v34  ;;  %v974_v20 = vpack.c.bf16 %v254_v19, %v252_v18  ;;  %v253_v23 = vld [vmem:[#allocation5 + $0x2d0] sm:$0xff]  ;;  %v256_v25 = vld [vmem:[#allocation5 + $0x2e8] sm:$0xff]  ;;  %v258_v26 = vld [vmem:[#allocation5 + $0x2f8] sm:$0xff] }
  0x56   :  { %917 = vmatpush1.bf16.msra.mxu0 %v916_v24  ;;  %v976_v24 = vpack.c.bf16 %v253_v23, %v251_v21  ;;  %v255_v28 = vld [vmem:[#allocation5 + $0x2e0] sm:$0xff]  ;;  %v257_v29 = vld [vmem:[#allocation5 + $0x2f0] sm:$0xff]  ;;  %v260_v32 = vld [vmem:[#allocation5 + $0x308] sm:$0xff] }
  0x57   :  { %919 = vmatprep.subr.bf16.mxu0 %v918_v27  ;;  %v978_v27 = vpack.c.bf16 %v258_v26, %v256_v25  ;;  %v980_v31 = vpack.c.bf16 %v257_v29, %v255_v28  ;;  %v262_v33 = vld [vmem:[#allocation5 + $0x318] sm:$0xff]  ;;  %v259_v35 = vld [vmem:[#allocation5 + $0x300] sm:$0xff]  ;;  %v261_v36 = vld [vmem:[#allocation5 + $0x310] sm:$0xff] }
  0x58   :  { %949 = vmatpush1.bf16.msra.mxu1 %v948_v45  ;;  %v982_v34 = vpack.c.bf16 %v262_v33, %v260_v32  ;;  %v264_v40 = vld [vmem:[#allocation5 + $0x328] sm:$0xff]  ;;  %v266_v41 = vld [vmem:[#allocation5 + $0x338] sm:$0xff]  ;;  %v265_v44 = vld [vmem:[#allocation5 + $0x330] sm:$0xff] }
  0x59   :  { %951 = vmatprep.subr.bf16.mxu1 %v950_v46  ;;  %v986_v43 = vpack.c.bf16 %v266_v41, %v264_v40  ;;  %v366_v46 = vld [vmem:[#allocation5 + $0x348] sm:$0xff]  ;;  %v368_v47 = vld [vmem:[#allocation5 + $0x358] sm:$0xff]  ;;  %v365_v48 = vld [vmem:[#allocation5 + $0x340] sm:$0xff] }
  0x5a   :  { %921 = vmatpush1.bf16.msra.mxu0 %v920_v38  ;;  %v984_v38 = vpack.c.bf16 %v261_v36, %v259_v35  ;;  %v367_v51 = vld [vmem:[#allocation5 + $0x350] sm:$0xff]  ;;  %v370_v52 = vld [vmem:[#allocation5 + $0x368] sm:$0xff]  ;;  %v369_v56 = vld [vmem:[#allocation5 + $0x360] sm:$0xff] }
  0x5b   :  { %923 = vmatprep.subr.bf16.mxu0 %v922_v42  ;;  %v263_v42 = vld [vmem:[#allocation5 + $0x320] sm:$0xff]  ;;  %v371_v57 = vld [vmem:[#allocation5 + $0x370] sm:$0xff]  ;;  %v374_v58 = vld [vmem:[#allocation5 + $0x388] sm:$0xff] }
  0x5c   :  { %953 = vmatpush1.bf16.msra.mxu1 %v952_v53  ;;  %v988_v45 = vpack.c.bf16 %v265_v44, %v263_v42  ;;  %v372_v53 = vld [vmem:[#allocation5 + $0x378] sm:$0xff]  ;;  %v373_v62 = vld [vmem:[#allocation5 + $0x380] sm:$0xff]  ;;  %v375_v63 = vld [vmem:[#allocation5 + $0x390] sm:$0xff] }
  0x5d   :  { %955 = vmatprep.subr.bf16.mxu1 %v954_v54  ;;  %v992_v54 = vpack.c.bf16 %v367_v51, %v365_v48  ;;  %v994_v55 = vpack.c.bf16 %v372_v53, %v370_v52  ;;  %v378_v0 = vld [vmem:[#allocation5 + $0x3a8] sm:$0xff]  ;;  %v377_v4 = vld [vmem:[#allocation5 + $0x3a0] sm:$0xff]  ;;  %v384_v7 = vld [vmem:[#allocation5 + $0x3d8] sm:$0xff] }
  0x5e   :  { %925 = vmatpush1.bf16.msra.mxu0 %v924_v50  ;;  %v990_v50 = vpack.c.bf16 %v368_v47, %v366_v46  ;;  %v382_v6 = vld [vmem:[#allocation5 + $0x3c8] sm:$0xff]  ;;  %v381_v10 = vld [vmem:[#allocation5 + $0x3c0] sm:$0xff]  ;;  %v388_v13 = vld [vmem:[#allocation5 + $0x3f8] sm:$0xff]  ;;  %v1346_v47 = vsub.s32 0, %v1327_v22 }
  0x5f   :  { %v1006_v9 = vpack.c.bf16 %v384_v7, %v382_v6  ;;  %v386_v12 = vld [vmem:[#allocation5 + $0x3e8] sm:$0xff]  ;;  %v385_v16 = vld [vmem:[#allocation5 + $0x3e0] sm:$0xff]  ;;  %v392_v19 = vld [vmem:[#allocation5 + $0x418] sm:$0xff] }
  0x60   :  { %957 = vmatpush1.bf16.msra.mxu1 %v956_v59  ;;  %991 = vmatprep.subr.bf16.mxu0 %v990_v50  ;;  %v376_v59 = vld [vmem:[#allocation5 + $0x398] sm:$0xff]  ;;  %v1010_v15 = vpack.c.bf16 %v388_v13, %v386_v12  ;;  %v390_v18 = vld [vmem:[#allocation5 + $0x408] sm:$0xff]  ;;  %v389_v23 = vld [vmem:[#allocation5 + $0x400] sm:$0xff]  ;;  %v1349_v50 = vsub.s32 1, %v1327_v22 }
  0x61   :  { %183 = vmatmul.mubr.f32.vlgmr.msra.gmra.mrb[0].mxu0 %v1336_v39  ;;  %959 = vmatprep.subr.bf16.mxu1 %v958_v60  ;;  %v996_v60 = vpack.c.bf16 %v371_v57, %v369_v56  ;;  %v998_v61 = vpack.c.bf16 %v376_v59, %v374_v58  ;;  %v1014_v21 = vpack.c.bf16 %v392_v19, %v390_v18  ;;  %v394_v25 = vld [vmem:[#allocation5 + $0x428] sm:$0xff]  ;;  %v396_v26 = vld [vmem:[#allocation5 + $0x438] sm:$0xff]  ;;  %v393_v29 = vld [vmem:[#allocation5 + $0x420] sm:$0xff] }
  0x62   :  { %993 = vmatpush1.bf16.msra.mxu0 %v992_v54  ;;  %v1018_v28 = vpack.c.bf16 %v396_v26, %v394_v25  ;;  %v398_v32 = vld [vmem:[#allocation5 + $0x448] sm:$0xff]  ;;  %v400_v33 = vld [vmem:[#allocation5 + $0x458] sm:$0xff]  ;;  %v397_v36 = vld [vmem:[#allocation5 + $0x440] sm:$0xff] }
  0x63   :  { %995 = vmatprep.subr.bf16.mxu0 %v994_v55  ;;  %v1022_v35 = vpack.c.bf16 %v400_v33, %v398_v32  ;;  %v402_v40 = vld [vmem:[#allocation5 + $0x468] sm:$0xff]  ;;  %v404_v41 = vld [vmem:[#allocation5 + $0x478] sm:$0xff]  ;;  %v401_v44 = vld [vmem:[#allocation5 + $0x460] sm:$0xff] }
  0x64   :  { %961 = vmatpush1.bf16.msra.mxu1 %v960_v1  ;;  %v380_v1 = vld [vmem:[#allocation5 + $0x3b8] sm:$0xff]  ;;  %v93_v48 = vld [vmem:[#allocation7] ss:$8 sm:$0x3]  ;;  %v415_v19 = vld [vmem:[#allocation5 + $0x4d0] sm:$0xff] }
  0x65   :  { %963 = vmatprep.subr.bf16.mxu1 %v962_v2  ;;  %v1000_v2 = vpack.c.bf16 %v375_v63, %v373_v62  ;;  %v1002_v3 = vpack.c.bf16 %v380_v1, %v378_v0  ;;  %v98_v51 = vrot.slane %v93_v48, %v1346_v47  ;;  %v102_v52 = vrot.slane %v93_v48, %v1349_v50  ;;  %v405_v7 = vld [vmem:[#allocation5 + $0x480] sm:$0xff]  ;;  %v419_v26 = vld [vmem:[#allocation5 + $0x4f0] sm:$0xff] }
  0x66   :  { %997 = vmatpush1.bf16.msra.mxu0 %v996_v60  ;;  %v409_v13 = vld [vmem:[#allocation5 + $0x4a0] sm:$0xff]  ;;  %v423_v33 = vld [vmem:[#allocation5 + $0x510] sm:$0xff] }
  0x67   :  { %999 = vmatprep.subr.bf16.mxu0 %v998_v61  ;;  %v417_v25 = vld [vmem:[#allocation5 + $0x4e0] sm:$0xff] }
  0x68   :  { %965 = vmatpush1.bf16.msra.mxu1 %v964_v5  ;;  %v379_v5 = vld [vmem:[#allocation5 + $0x3b0] sm:$0xff]  ;;  %v421_v32 = vld [vmem:[#allocation5 + $0x500] sm:$0xff] }
  0x69   :  { %967 = vmatprep.subr.bf16.mxu1 %v966_v8  ;;  %v1004_v8 = vpack.c.bf16 %v379_v5, %v377_v4  ;;  %v406_v4 = vld [vmem:[#allocation5 + $0x488] sm:$0xff]  ;;  %v408_v5 = vld [vmem:[#allocation5 + $0x498] sm:$0xff] }
  0x6a   :  { %1001 = vmatpush1.bf16.msra.mxu0 %v1000_v2  ;;  %v1030_v6 = vpack.c.bf16 %v408_v5, %v406_v4  ;;  %v643_v4 = vld [vmem:[#allocation5 + $0x810] sm:$0xff] }
  0x6b   :  { %1003 = vmatprep.subr.bf16.mxu0 %v1002_v3 }
  0x6c   :  { %969 = vmatpush1.bf16.msra.mxu1 %v968_v11  ;;  %v383_v11 = vld [vmem:[#allocation5 + $0x3d0] sm:$0xff] }
  0x6d   :  { %971 = vmatprep.subr.bf16.mxu1 %v970_v14  ;;  %v1008_v14 = vpack.c.bf16 %v383_v11, %v381_v10  ;;  %v410_v10 = vld [vmem:[#allocation5 + $0x4a8] sm:$0xff]  ;;  %v412_v11 = vld [vmem:[#allocation5 + $0x4b8] sm:$0xff] }
  0x6e   :  { %1005 = vmatpush1.bf16.msra.mxu0 %v1004_v8  ;;  %v407_v8 = vld [vmem:[#allocation5 + $0x490] sm:$0xff]  ;;  %v1034_v12 = vpack.c.bf16 %v412_v11, %v410_v10  ;;  %v721_v11 = vmul.f32 %v1332_v37, %v1332_v37  ;;  %v724_v37 = vld [vmem:[#allocation5 + $0x8a0] sm:$0xff] }
  0x6f   :  { %1007 = vmatprep.subr.bf16.mxu0 %v1006_v9  ;;  %v1032_v9 = vpack.c.bf16 %v407_v8, %v405_v7  ;;  %v645_v7 = vld [vmem:[#allocation5 + $0x830] sm:$0xff] }
  0x70   :  { %973 = vmatpush1.bf16.msra.mxu1 %v972_v17  ;;  %v387_v17 = vld [vmem:[#allocation5 + $0x3f0] sm:$0xff] }
  0x71   :  { %975 = vmatprep.subr.bf16.mxu1 %v974_v20  ;;  %v1012_v20 = vpack.c.bf16 %v387_v17, %v385_v16  ;;  %v414_v16 = vld [vmem:[#allocation5 + $0x4c8] sm:$0xff]  ;;  %v416_v17 = vld [vmem:[#allocation5 + $0x4d8] sm:$0xff]  ;;  %v647_v10 = vld [vmem:[#allocation5 + $0x850] sm:$0xff] }
  0x72   :  { %1009 = vmatpush1.bf16.msra.mxu0 %v1008_v14  ;;  %v411_v14 = vld [vmem:[#allocation5 + $0x4b0] sm:$0xff]  ;;  %v1038_v18 = vpack.c.bf16 %v416_v17, %v414_v16  ;;  %v749_v16 = vrot.slane %v721_v11, %v1330_v30  ;;  %v722_v17 = vld [vmem:[#allocation5 + $0x880] sm:$0xff] }
  0x73   :  { %1011 = vmatprep.subr.bf16.mxu0 %v1010_v15  ;;  %v1036_v15 = vpack.c.bf16 %v411_v14, %v409_v13  ;;  %v648_v13 = vld [vmem:[#allocation5 + $0x860] sm:$0xff]  ;;  %v649_v14 = vld [vmem:[#allocation5 + $0x870] sm:$0xff] }
  0x74   :  { %977 = vmatpush1.bf16.msra.mxu1 %v976_v24  ;;  %v391_v24 = vld [vmem:[#allocation5 + $0x410] sm:$0xff]  ;;  %v726_v30 = vld [vmem:[#allocation5 + $0x8c0] sm:$0xff] }
  0x75   :  { %979 = vmatprep.subr.bf16.mxu1 %v978_v27  ;;  %v1016_v27 = vpack.c.bf16 %v391_v24, %v389_v23  ;;  %v420_v23 = vld [vmem:[#allocation5 + $0x4f8] sm:$0xff]  ;;  %v529_v11 = vld [vmem:[#allocation5 + $0x560] sm:$0xff] }
  0x76   :  { %1013 = vmatpush1.bf16.msra.mxu0 %v1012_v20 }
  0x77   :  { %1015 = vmatprep.subr.bf16.mxu0 %v1014_v21  ;;  %v418_v21 = vld [vmem:[#allocation5 + $0x4e8] sm:$0xff] }
  0x78   :  { %981 = vmatpush1.bf16.msra.mxu1 %v980_v31  ;;  %v395_v31 = vld [vmem:[#allocation5 + $0x430] sm:$0xff]  ;;  %v1042_v24 = vpack.c.bf16 %v420_v23, %v418_v21 }
  0x79   :  { %983 = vmatprep.subr.bf16.mxu1 %v982_v34  ;;  %v1020_v34 = vpack.c.bf16 %v395_v31, %v393_v29  ;;  %v424_v29 = vld [vmem:[#allocation5 + $0x518] sm:$0xff]  ;;  %v727_v23 = vld [vmem:[#allocation5 + $0x8d0] sm:$0xff] }
  0x7a   :  { %1017 = vmatpush1.bf16.msra.mxu0 %v1016_v27  ;;  %v1044_v27 = vpack.c.bf16 %v419_v26, %v417_v25  ;;  %v728_v25 = vld [vmem:[#allocation5 + $0x8e0] sm:$0xff]  ;;  %v729_v26 = vld [vmem:[#allocation5 + $0x8f0] sm:$0xff] }
  0x7b   :  { %1019 = vmatprep.subr.bf16.mxu0 %v1018_v28  ;;  %v422_v28 = vld [vmem:[#allocation5 + $0x508] sm:$0xff] }
  0x7c   :  { %985 = vmatpush1.bf16.msra.mxu1 %v984_v38  ;;  %v399_v38 = vld [vmem:[#allocation5 + $0x450] sm:$0xff]  ;;  %v1046_v31 = vpack.c.bf16 %v424_v29, %v422_v28  ;;  %v730_v28 = vld [vmem:[#allocation5 + $0x900] sm:$0xff] }
  0x7d   :  { %987 = vmatprep.subr.bf16.mxu1 %v986_v43  ;;  %v1024_v42 = vpack.c.bf16 %v399_v38, %v397_v36  ;;  %v1026_v43 = vpack.c.bf16 %v404_v41, %v402_v40  ;;  %v428_v36 = vld [vmem:[#allocation5 + $0x538] sm:$0xff]  ;;  %v425_v40 = vld [vmem:[#allocation5 + $0x520] sm:$0xff]  ;;  %v427_v41 = vld [vmem:[#allocation5 + $0x530] sm:$0xff] }
  0x7e   :  { %1021 = vmatpush1.bf16.msra.mxu0 %v1020_v34  ;;  %v1048_v34 = vpack.c.bf16 %v423_v33, %v421_v32  ;;  %v733_v32 = vld [vmem:[#allocation5 + $0x930] sm:$0xff] }
  0x7f   :  { %1023 = vmatprep.subr.bf16.mxu0 %v1022_v35  ;;  %v426_v35 = vld [vmem:[#allocation5 + $0x528] sm:$0xff] }
  0x80   :  { %989 = vmatpush1.bf16.msra.mxu1 %v988_v45  ;;  %v403_v45 = vld [vmem:[#allocation5 + $0x470] sm:$0xff]  ;;  %v1050_v38 = vpack.c.bf16 %v428_v36, %v426_v35 }
  0x81   :  { %v1028_v46 = vpack.c.bf16 %v403_v45, %v401_v44  ;;  %v631_v44 = vld [vmem:[#allocation5 + $0x750] sm:$0xff]  ;;  %v632_v45 = vld [vmem:[#allocation5 + $0x760] sm:$0xff] }
  0x82   :  { %1025 = vmatpush1.bf16.msra.mxu0 %v1024_v42  ;;  %v1052_v42 = vpack.c.bf16 %v427_v41, %v425_v40  ;;  %v735_v35 = vld [vmem:[#allocation5 + $0x950] sm:$0xff] }
  0x83   :  { %1027 = vmatprep.subr.bf16.mxu0 %v1026_v43  ;;  %v630_v43 = vld [vmem:[#allocation5 + $0x740] sm:$0xff]  ;;  %v737_v40 = vld [vmem:[#allocation5 + $0x970] sm:$0xff] }
  0x84   :  { %v1087_v48 = vpack.c.bf16 %v631_v44, %v630_v43  ;;  %v739_v43 = vld [vmem:[#allocation5 + $0x990] sm:$0xff] }
  0x86   :  { %1029 = vmatpush1.bf16.msra.mxu0 %v1028_v46  ;;  %v1269_v46 = vmov 0.0|0.0  }
  0x87   :  { %1031 = vmatprep.subr.bf16.mxu0 %v1030_v6  ;;  %1086 = vmatprep.subr.bf16.mxu1 %v1269_v46  ;;  %v644_v6 = vld [vmem:[#allocation5 + $0x820] sm:$0xff] }
  0x88   :  { %v1108_v8 = vpack.c.bf16 %v645_v7, %v644_v6 }
  0x8a   :  { %1033 = vmatpush1.bf16.msra.mxu0 %v1032_v9  ;;  %v646_v9 = vld [vmem:[#allocation5 + $0x840] sm:$0xff] }
  0x8b   :  { %1035 = vmatprep.subr.bf16.mxu0 %v1034_v12  ;;  %v1111_v12 = vpack.c.bf16 %v647_v10, %v646_v9 }
  0x8e   :  { %1037 = vmatpush1.bf16.msra.mxu0 %v1036_v15  ;;  %v1114_v15 = vpack.c.bf16 %v649_v14, %v648_v13  ;;  %v547_v14 = vld [vmem:[#allocation5 + $0x680] sm:$0xff] }
  0x8f   :  { %1039 = vmatprep.subr.bf16.mxu0 %v1038_v18  ;;  %v723_v18 = vld [vmem:[#allocation5 + $0x890] sm:$0xff] }
 0x134   :  { %v184_v53 = vpop.f32.mrb[0].mxu0 }
 0x135   :  { %v185_v54 = vadd.f32 %v184_v53, %v98_v51  ;;  %v186_v55 = vpop.f32.mrb[1].mxu0  ;;  %v633_v51 = vld [vmem:[#allocation5 + $0x770] sm:$0xff]  ;;  %v634_v53 = vld [vmem:[#allocation5 + $0x780] sm:$0xff] }
 0x136   :  { %v187_v56 = vadd.f32 %v186_v55, %v102_v52  ;;  %v1090_v52 = vpack.c.bf16 %v633_v51, %v632_v45  ;;  %v740_v45 = vld [vmem:[#allocation5 + $0x9a0] sm:$0xff] }
 0x137   :  { %v191_v57 = vmul.f32 1.442695, %v185_v54  ;;  %vm189_vm1 = vcmp.gt.f32.partialorder %v185_v54, 0.0 }
 0x138   :  { %v193_v58 = vmul.f32 1.442695, %v187_v56  ;;  %vm190_vm2 = vcmp.gt.f32.partialorder %v187_v56, 0.0 }
 0x139   :  { %1157 = vpow2.f32 %v191_v57  ;;  %v637_v57 = vld [vmem:[#allocation5 + $0x7b0] sm:$0xff] }
 0x13a   :  { %1159 = vpow2.f32 %v193_v58 }
 0x143   :  { %v1158_v59 = vpop.eup %1157 }
 0x144   :  { %v1160_v60 = vpop.eup %1159  ;;  %v843_v61 = vadd.f32 -1.0, %v1158_v59  ;;  %v638_v59 = vld [vmem:[#allocation5 + $0x7c0] sm:$0xff] }
 0x145   :  { %v844_v62 = vadd.f32 -1.0, %v1160_v60  ;;  %v639_v60 = vld [vmem:[#allocation5 + $0x7d0] sm:$0xff] }
 0x146   :  { %v197_v63 = vmul.f32 1.6732632, %v843_v61  ;;  %v543_v61 = vld [vmem:[#allocation5 + $0x640] sm:$0xff] }
 0x147   :  { %v198_v22 = vmul.f32 1.6732632, %v844_v62  ;;  %v544_v62 = vld [vmem:[#allocation5 + $0x650] sm:$0xff] }
 0x148   :  { %v199_v0 = vsel %vm189_vm1, %v185_v54, %v197_v63  ;;  %v635_v54 = vld [vmem:[#allocation5 + $0x790] sm:$0xff]  ;;  %v1054_v63 = vpack.c.bf16 %v544_v62, %v543_v61 }
 0x149   :  { %v200_v1 = vsel %vm190_vm2, %v187_v56, %v198_v22  ;;  %v201_v3 = vmul.f32 1.050701, %v199_v0  ;;  %v1093_v55 = vpack.c.bf16 %v635_v54, %v634_v53  ;;  %v636_v56 = vld [vmem:[#allocation5 + $0x7a0] sm:$0xff]  ;;  %v1099_v22 = vpack.c.bf16 %v639_v60, %v638_v59 }
 0x14a   :  { %v202_v2 = vmul.f32 1.050701, %v200_v1  ;;  %v1096_v58 = vpack.c.bf16 %v637_v57, %v636_v56  ;;  %v640_v0 = vld [vmem:[#allocation5 + $0x7e0] sm:$0xff]  ;;  %v641_v1 = vld [vmem:[#allocation5 + $0x7f0] sm:$0xff] }
 0x14c   :  { %344 = vmatprep.mubr.f32.mxu1 %v202_v2  ;;  %v1102_v2 = vpack.c.bf16 %v641_v1, %v640_v0  ;;  %v527_v1 = vld [vmem:[#allocation5 + $0x540] sm:$0xff] }
 0x14d   :  { %345 = vmatmul.mubr.f32.vlgmr.msra.gmra.mrb[0].mxu1 %v201_v3  ;;  %v642_v3 = vld [vmem:[#allocation5 + $0x800] sm:$0xff] }
 0x14e   :  { %849 = vmatprep.mubr.msk.f32.mxu1 %vm115_vm0, %v1340_v49  ;;  %v413_v49 = vld [vmem:[#allocation5 + $0x4c0] sm:$0xff]  ;;  %1088 = vmatpush1.bf16.msra.mxu1 %v1087_v48  ;;  %v1105_v5 = vpack.c.bf16 %v643_v4, %v642_v3  ;;  %v741_v48 = vld [vmem:[#allocation5 + $0x9b0] sm:$0xff] }
 0x14f   :  { %v1040_v20 = vpack.c.bf16 %v415_v19, %v413_v49  ;;  %1089 = vmatprep.subr.bf16.mxu1 %v1269_v46  ;;  %v1117_v49 = vpack.c.bf16 %v723_v18, %v722_v17  ;;  %v750_v19 = vcombine.high %v749_v16, %v749_v16  ;;  %v1144_v51 = vpack.c.bf16 %v741_v48, %v740_v45  ;;  %v545_v4 = vld [vmem:[#allocation5 + $0x660] sm:$0xff]  ;;  %v532_v18 = vld [vmem:[#allocation5 + $0x590] sm:$0xff] }
 0x150   :  { %v531_v17 = vld [vmem:[#allocation5 + $0x580] sm:$0xff]  ;;  %v558_v45 = vld [vmem:[#allocation5 + $0x730] sm:$0xff] }
 0x151   :  { %1041 = vmatpush1.bf16.msra.mxu0 %v1040_v20  ;;  %v725_v20 = vld [vmem:[#allocation5 + $0x8b0] sm:$0xff] }
 0x152   :  { %1043 = vmatprep.subr.bf16.mxu0 %v1042_v24  ;;  %1091 = vmatpush1.bf16.msra.mxu1 %v1090_v52  ;;  %v1120_v21 = vpack.c.bf16 %v725_v20, %v724_v37  ;;  %v1123_v24 = vpack.c.bf16 %v727_v23, %v726_v30  ;;  %v268_v52 = vld [vmem:[#allocation7 + $0x1] ss:$8 sm:$0x3]  ;;  %v550_v37 = vld [vmem:[#allocation5 + $0x6b0] sm:$0xff] }
 0x153   :  { %1092 = vmatprep.subr.bf16.mxu1 %v1269_v46  ;;  %v273_v53 = vrot.slane %v268_v52, %v1346_v47  ;;  %v277_v54 = vrot.slane %v268_v52, %v1349_v50  ;;  %v534_v30 = vld [vmem:[#allocation5 + $0x5b0] sm:$0xff] }
 0x154   :  { %v542_v52 = vld [vmem:[#allocation5 + $0x630] sm:$0xff] }
 0x155   :  { %1045 = vmatpush1.bf16.msra.mxu0 %v1044_v27  ;;  %v1126_v27 = vpack.c.bf16 %v729_v26, %v728_v25  ;;  %v552_v25 = vld [vmem:[#allocation5 + $0x6d0] sm:$0xff] }
 0x156   :  { %1047 = vmatprep.subr.bf16.mxu0 %v1046_v31  ;;  %1094 = vmatpush1.bf16.msra.mxu1 %v1093_v55  ;;  %v732_v31 = vld [vmem:[#allocation5 + $0x920] sm:$0xff] }
 0x157   :  { %1095 = vmatprep.subr.bf16.mxu1 %v1269_v46  ;;  %v1132_v33 = vpack.c.bf16 %v733_v32, %v732_v31  ;;  %v554_v31 = vld [vmem:[#allocation5 + $0x6f0] sm:$0xff] }
 0x159   :  { %1049 = vmatpush1.bf16.msra.mxu0 %v1048_v34  ;;  %v734_v34 = vld [vmem:[#allocation5 + $0x940] sm:$0xff] }
 0x15a   :  { %1051 = vmatprep.subr.bf16.mxu0 %v1050_v38  ;;  %1097 = vmatpush1.bf16.msra.mxu1 %v1096_v58  ;;  %v1135_v36 = vpack.c.bf16 %v735_v35, %v734_v34  ;;  %v736_v38 = vld [vmem:[#allocation5 + $0x960] sm:$0xff]  ;;  %v538_v34 = vld [vmem:[#allocation5 + $0x5f0] sm:$0xff] }
 0x15b   :  { %1098 = vmatprep.subr.bf16.mxu1 %v1269_v46  ;;  %v1138_v41 = vpack.c.bf16 %v737_v40, %v736_v38  ;;  %v556_v38 = vld [vmem:[#allocation5 + $0x710] sm:$0xff] }
 0x15d   :  { %1053 = vmatpush1.bf16.msra.mxu0 %v1052_v42  ;;  %v738_v42 = vld [vmem:[#allocation5 + $0x980] sm:$0xff] }
 0x15e   :  { %1055 = vmatprep.subr.bf16.mxu0 %v1054_v63  ;;  %1100 = vmatpush1.bf16.msra.mxu1 %v1099_v22  ;;  %v1141_v44 = vpack.c.bf16 %v739_v43, %v738_v42  ;;  %v540_v42 = vld [vmem:[#allocation5 + $0x610] sm:$0xff] }
 0x15f   :  { %1101 = vmatprep.subr.bf16.mxu1 %v1269_v46 }
 0x162   :  { %1103 = vmatpush1.bf16.msra.mxu1 %v1102_v2  ;;  %v528_v2 = vld [vmem:[#allocation5 + $0x550] sm:$0xff] }
 0x163   :  { %1104 = vmatprep.subr.bf16.mxu1 %v1269_v46 }
 0x166   :  { %1106 = vmatpush1.bf16.msra.mxu1 %v1105_v5  ;;  %v546_v5 = vld [vmem:[#allocation5 + $0x670] sm:$0xff] }
 0x167   :  { %1107 = vmatprep.subr.bf16.mxu1 %v1269_v46  ;;  %v1058_v10 = vpack.c.bf16 %v546_v5, %v545_v4 }
 0x16a   :  { %1109 = vmatpush1.bf16.msra.mxu1 %v1108_v8  ;;  %v1056_v8 = vpack.c.bf16 %v528_v2, %v527_v1 }
 0x16b   :  { %1110 = vmatprep.subr.bf16.mxu1 %v1269_v46 }
 0x16e   :  { %1112 = vmatpush1.bf16.msra.mxu1 %v1111_v12  ;;  %v530_v12 = vld [vmem:[#allocation5 + $0x570] sm:$0xff] }
 0x16f   :  { %1113 = vmatprep.subr.bf16.mxu1 %v1269_v46  ;;  %v1060_v13 = vpack.c.bf16 %v530_v12, %v529_v11 }
 0x172   :  { %1115 = vmatpush1.bf16.msra.mxu1 %v1114_v15  ;;  %v548_v15 = vld [vmem:[#allocation5 + $0x690] sm:$0xff] }
 0x173   :  { %1116 = vmatprep.subr.bf16.mxu1 %v1269_v46 }
 0x175   :  { %715 = vmatmul.mubr.f32.vlgmr.msra.gmra.mrb[2].mxu1 %v1336_v39  ;;  %v731_v39 = vld [vmem:[#allocation5 + $0x910] sm:$0xff] }
 0x176   :  { %1118 = vmatpush1.bf16.msra.mxu1 %v1117_v49  ;;  %850 = vmatprep.mubr.msk.f32.mxu1 %vm115_vm0, %v750_v19  ;;  %v1129_v29 = vpack.c.bf16 %v731_v39, %v730_v28  ;;  %v1064_v49 = vpack.c.bf16 %v532_v18, %v531_v17  ;;  %v549_v19 = vld [vmem:[#allocation5 + $0x6a0] sm:$0xff]  ;;  %v536_v28 = vld [vmem:[#allocation5 + $0x5d0] sm:$0xff] }
 0x177   :  { %1119 = vmatprep.subr.bf16.mxu1 %v1269_v46  ;;  %v1066_v20 = vpack.c.bf16 %v550_v37, %v549_v19 }
 0x17a   :  { %1121 = vmatpush1.bf16.msra.mxu1 %v1120_v21  ;;  %v533_v21 = vld [vmem:[#allocation5 + $0x5a0] sm:$0xff] }
 0x17b   :  { %1122 = vmatprep.subr.bf16.mxu1 %v1269_v46  ;;  %v1068_v23 = vpack.c.bf16 %v534_v30, %v533_v21 }
 0x17e   :  { %1124 = vmatpush1.bf16.msra.mxu1 %v1123_v24  ;;  %v551_v24 = vld [vmem:[#allocation5 + $0x6c0] sm:$0xff] }
 0x17f   :  { %1125 = vmatprep.subr.bf16.mxu1 %v1269_v46  ;;  %v1070_v26 = vpack.c.bf16 %v552_v25, %v551_v24 }
 0x182   :  { %1127 = vmatpush1.bf16.msra.mxu1 %v1126_v27  ;;  %v535_v27 = vld [vmem:[#allocation5 + $0x5c0] sm:$0xff] }
 0x183   :  { %1128 = vmatprep.subr.bf16.mxu1 %v1269_v46  ;;  %v1072_v39 = vpack.c.bf16 %v536_v28, %v535_v27 }
 0x186   :  { %1130 = vmatpush1.bf16.msra.mxu1 %v1129_v29  ;;  %v553_v29 = vld [vmem:[#allocation5 + $0x6e0] sm:$0xff] }
 0x187   :  { %1131 = vmatprep.subr.bf16.mxu1 %v1269_v46  ;;  %v1074_v32 = vpack.c.bf16 %v554_v31, %v553_v29 }
 0x18a   :  { %1133 = vmatpush1.bf16.msra.mxu1 %v1132_v33  ;;  %v537_v33 = vld [vmem:[#allocation5 + $0x5e0] sm:$0xff] }
 0x18b   :  { %1134 = vmatprep.subr.bf16.mxu1 %v1269_v46  ;;  %v1076_v35 = vpack.c.bf16 %v538_v34, %v537_v33 }
 0x18e   :  { %1136 = vmatpush1.bf16.msra.mxu1 %v1135_v36  ;;  %v555_v36 = vld [vmem:[#allocation5 + $0x700] sm:$0xff] }
 0x18f   :  { %1137 = vmatprep.subr.bf16.mxu1 %v1269_v46  ;;  %v1078_v40 = vpack.c.bf16 %v556_v38, %v555_v36 }
 0x192   :  { %1139 = vmatpush1.bf16.msra.mxu1 %v1138_v41  ;;  %v539_v41 = vld [vmem:[#allocation5 + $0x600] sm:$0xff] }
 0x193   :  { %1140 = vmatprep.subr.bf16.mxu1 %v1269_v46  ;;  %v1080_v43 = vpack.c.bf16 %v540_v42, %v539_v41 }
 0x196   :  { %1142 = vmatpush1.bf16.msra.mxu1 %v1141_v44  ;;  %v557_v44 = vld [vmem:[#allocation5 + $0x720] sm:$0xff] }
 0x197   :  { %1143 = vmatprep.subr.bf16.mxu1 %v1269_v46  ;;  %v1082_v48 = vpack.c.bf16 %v558_v45, %v557_v44 }
 0x19a   :  { %1145 = vmatpush1.bf16.msra.mxu1 %v1144_v51  ;;  %v541_v51 = vld [vmem:[#allocation5 + $0x620] sm:$0xff] }
 0x19d   :  { %819 = vmatmul.mubr.f32.vlgmr.msra.gmra.mrb[2].mxu1 %v749_v16  ;;  %v1062_v16 = vpack.c.bf16 %v548_v15, %v547_v14 }
 0x220   :  { %v346_v55 = vpop.f32.mrb[0].mxu1 }
 0x221   :  { %v347_v56 = vadd.f32 %v346_v55, %v273_v53  ;;  %v348_v57 = vpop.f32.mrb[1].mxu1  ;;  %v1084_v53 = vpack.c.bf16 %v542_v52, %v541_v51 }
 0x222   :  { %v349_v58 = vadd.f32 %v348_v57, %v277_v54 }
 0x223   :  { %v353_v59 = vmul.f32 1.442695, %v347_v56  ;;  %vm351_vm3 = vcmp.gt.f32.partialorder %v347_v56, 0.0 }
 0x224   :  { %v355_v60 = vmul.f32 1.442695, %v349_v58  ;;  %vm352_vm4 = vcmp.gt.f32.partialorder %v349_v58, 0.0 }
 0x225   :  { %1161 = vpow2.f32 %v353_v59 }
 0x226   :  { %1163 = vpow2.f32 %v355_v60 }
 0x22f   :  { %v1162_v61 = vpop.eup %1161 }
 0x230   :  { %v1164_v62 = vpop.eup %1163  ;;  %v845_v63 = vadd.f32 -1.0, %v1162_v61 }
 0x231   :  { %v846_v22 = vadd.f32 -1.0, %v1164_v62 }
 0x232   :  { %v359_v46 = vmul.f32 1.6732632, %v845_v63 }
 0x233   :  { %v360_v0 = vmul.f32 1.6732632, %v846_v22 }
 0x234   :  { %v361_v3 = vsel %vm351_vm3, %v347_v56, %v359_v46  ;;  %v430_v56 = vld [vmem:[#allocation7 + $0x2] ss:$8 sm:$0x3] }
 0x235   :  { %v362_v6 = vsel %vm352_vm4, %v349_v58, %v360_v0  ;;  %v363_v9 = vmul.f32 1.050701, %v361_v3  ;;  %v435_v57 = vrot.slane %v430_v56, %v1346_v47  ;;  %v439_v58 = vrot.slane %v430_v56, %v1349_v50 }
 0x236   :  { %v364_v7 = vmul.f32 1.050701, %v362_v6 }
 0x238   :  { %506 = vmatprep.mubr.f32.mxu0 %v364_v7 }
 0x239   :  { %507 = vmatmul.mubr.f32.vlgmr.msra.gmra.mrb[2].mxu0 %v363_v9 }
 0x23a   :  { %1057 = vmatpush3.bf16.msra.mxu0 %v1056_v8  ;;  %v559_v8 = vld [vmem:[#allocation7 + $0x3] ss:$0 sm:$0xff] }
 0x23b   :  { %1059 = vmatprep.subr.bf16.mxu0 %v1058_v10 }
 0x23e   :  { %1061 = vmatpush3.bf16.msra.mxu0 %v1060_v13 }
 0x23f   :  { %1063 = vmatprep.subr.bf16.mxu0 %v1062_v16 }
 0x242   :  { %1065 = vmatpush3.bf16.msra.mxu0 %v1064_v49 }
 0x243   :  { %1067 = vmatprep.subr.bf16.mxu0 %v1066_v20 }
 0x246   :  { %1069 = vmatpush3.bf16.msra.mxu0 %v1068_v23 }
 0x247   :  { %1071 = vmatprep.subr.bf16.mxu0 %v1070_v26 }
 0x24a   :  { %1073 = vmatpush3.bf16.msra.mxu0 %v1072_v39 }
 0x24b   :  { %1075 = vmatprep.subr.bf16.mxu0 %v1074_v32 }
 0x24e   :  { %1077 = vmatpush3.bf16.msra.mxu0 %v1076_v35 }
 0x24f   :  { %1079 = vmatprep.subr.bf16.mxu0 %v1078_v40 }
 0x252   :  { %1081 = vmatpush3.bf16.msra.mxu0 %v1080_v43 }
 0x253   :  { %1083 = vmatprep.subr.bf16.mxu0 %v1082_v48 }
 0x256   :  { %1085 = vmatpush3.bf16.msra.mxu0 %v1084_v53 }
 0x270   :  { %v820_v54 = vpop.f32.mrb[2].mxu1 }
 0x271   :  { %v822_v55 = vpop.f32.mrb[3].mxu1 }
 0x30c   :  { %v508_v59 = vpop.f32.mrb[2].mxu0 }
 0x30d   :  { %v509_v60 = vadd.f32 %v508_v59, %v435_v57  ;;  %v510_v61 = vpop.f32.mrb[3].mxu0 }
 0x30e   :  { %v511_v62 = vadd.f32 %v510_v61, %v439_v58 }
 0x30f   :  { %v515_v63 = vmul.f32 1.442695, %v509_v60  ;;  %vm513_vm5 = vcmp.gt.f32.partialorder %v509_v60, 0.0 }
 0x310   :  { %v517_v22 = vmul.f32 1.442695, %v511_v62  ;;  %vm514_vm6 = vcmp.gt.f32.partialorder %v511_v62, 0.0 }
 0x311   :  { %1165 = vpow2.f32 %v515_v63 }
 0x312   :  { %1167 = vpow2.f32 %v517_v22 }
 0x31b   :  { %v1166_v46 = vpop.eup %1165 }
 0x31c   :  { %v1168_v0 = vpop.eup %1167  ;;  %v847_v1 = vadd.f32 -1.0, %v1166_v46 }
 0x31d   :  { %v848_v2 = vadd.f32 -1.0, %v1168_v0 }
 0x31e   :  { %v521_v3 = vmul.f32 1.6732632, %v847_v1 }
 0x31f   :  { %v522_v4 = vmul.f32 1.6732632, %v848_v2 }
 0x320   :  { %v523_v5 = vsel %vm513_vm5, %v509_v60, %v521_v3 }
 0x321   :  { %v524_v47 = vsel %vm514_vm6, %v511_v62, %v522_v4  ;;  %v525_v50 = vmul.f32 1.050701, %v523_v5 }
 0x322   :  { %v526_v6 = vmul.f32 1.050701, %v524_v47 }
 0x324   :  { %624 = vmatprep.mubr.f32.mxu0 %v526_v6 }
 0x325   :  { %625 = vmatmul.mubr.f32.vlgmr.msra.gmra.mrb[4].mxu0 %v525_v50 }
 0x3f8   :  { %v883_v7 = vpop.f32.mrb[4].mxu0 }
 0x3f9   :  { %v884_v9 = vpop.f32.mrb[5].mxu0 }
 0x3fa   :  { %v885_v10 = vadd.f32 %v884_v9, %v883_v7 }
 0x3fc   :  { %v627_v11 = vadd.f32 %v885_v10, %v559_v8 }
 0x3fe   :  { %v1146_v12 = vadd.f32 %v820_v54, %v627_v11 }
 0x400   :  { %825 = vst [vmem:[#allocation8] sm:$0x3] %v1146_v12 }
 0x401   :  { %1246 = shalt.err (!%p1243_p0)
}
 0x402   :  { %s1247_s25 = scalar_lea.hbm %s1399_s3, 32 }
 0x403   :  { %p1248_p1 = scmp.ne.s32.totalorder %s1399_s3, %s1247_s25  ;;  %p1251_p2 = scmp.lt.u32.totalorder %s1247_s25, %s1399_s3 }
 0x405   :  { %p1253_p3 = pnand %p1251_p2, %p1248_p1 }
 0x407   :  { %1256 = shalt.err (!%p1253_p3)
}
 0x408   :  { %835 = dma.vmem_to_hbm [thread:$0]  %s833_s21, 32, %s1399_s3, [#allocation4]  }
 0x409   :  { %1261 = dma.done.wait [#allocation4], 32  }
 0x40a   :  { %1262 = vsyncadd [#allocation4], 4294967264 }
 0x40b   :  { %839 = vsyncpa [#allocation3], 1 }
 0x40c   :  { %840 = vsyncpa [#allocation6], 1 }
 0x40d   :  { %841 = vsyncpa [#allocation4], 1 }

</bundles_post_ra>
